<compile_context>
chip_gen: v6e
topology: v6e:2x2x1
jax: 0.10.0
libtpu: 0.0.40
codegen_flags: <defaults>
</compile_context>

<pallas_src>
import jax
import jax.numpy as jnp
from jax.experimental import pallas as pl
from jax.experimental.pallas import tpu as pltpu


def _l2norm_kernel(x_ref, g_ref, o_ref):
    # x_ref: (1, C, TS) block, g_ref: (1, C, 1), o_ref: (1, C, TS)
    x = x_ref[...].astype(jnp.float32)
    # F.normalize(p=2, dim=1): x / max(||x||_2, 1e-12)
    #   == x * rsqrt(max(sum(x^2), 1e-24))
    sq_sum = jnp.sum(x * x, axis=1, keepdims=True)          # (1, 1, TS)
    inv = jax.lax.rsqrt(jnp.maximum(sq_sum, 1e-24))          # EUP rsqrt, no divide
    g = g_ref[...].astype(jnp.float32)                       # (1, C, 1)
    o_ref[...] = (x * (inv * g)).astype(o_ref.dtype)


def l2norm(x_nchw, gamma, *, tile_s=2048):
    """x_nchw: (N, C, H, W); gamma: (1, C, 1, 1). Returns (N, C, H, W)."""
    N, C, H, W = x_nchw.shape
    S = H * W
    dtype = x_nchw.dtype

    # NCHW -> (N, C, S): a free reshape (no transpose, no pad).
    x3 = x_nchw.reshape(N, C, S)
    g3 = gamma.reshape(1, C, 1).astype(dtype)

    # Tile selection for the lane (spatial) axis:
    #  - must be a multiple of 128, or equal the full extent S.
    #  - 512-2048 lanes amortizes per-grid-step overhead (~0.35us).
    # VMEM budget: 2 bufs x (in + out) x C*ts*4B; with C up to 512 and
    # ts=2048 that's ~16 MiB, well under the 32 MiB scoped default (v7x-safe).
    if S % 128 == 0:
        ts = max(128, (min(tile_s, S) // 128) * 128)
    else:
        ts = S  # full extent satisfies the (8,128) BlockSpec rule
    grid = (N, pl.cdiv(S, ts))

    out3 = pl.pallas_call(
        _l2norm_kernel,
        out_shape=jax.ShapeDtypeStruct((N, C, S), dtype),
        grid_spec=pltpu.PrefetchScalarGridSpec(
            num_scalar_prefetch=0,
            grid=grid,
            in_specs=[
                pl.BlockSpec((1, C, ts), lambda n, s: (n, 0, s)),
                pl.BlockSpec((1, C, 1), lambda n, s: (0, 0, 0)),
            ],
            out_specs=pl.BlockSpec((1, C, ts), lambda n, s: (n, 0, s)),
        ),
        compiler_params=pltpu.CompilerParams(
            dimension_semantics=("parallel", "parallel"),
        ),
    )(x3, g3)

    return out3.reshape(N, C, H, W)


if __name__ == "__main__":
    # Deterministic setup consistent with L2Norm(inplanes=4, gamma_init=10)
    N, C, H, W = 2, 4, 16, 16
    key = jax.random.PRNGKey(0)
    x = jax.random.normal(key, (N, C, H, W), dtype=jnp.float32)

    # Parameter init as in __init__: gamma of shape (1, C, 1, 1) filled with 10.
    gamma = jnp.full((1, C, 1, 1), 10.0, dtype=jnp.float32)

    out = l2norm(x, gamma)
    out = jax.block_until_ready(out)

    # Reference check (plain JAX, mirrors F.normalize(p=2, dim=1) + scale)
    norm = jnp.maximum(jnp.sqrt(jnp.sum(x * x, axis=1, keepdims=True)), 1e-12)
    ref = x / norm * gamma
    assert out.shape == (N, C, H, W)
    assert jnp.allclose(out, ref, atol=1e-5, rtol=1e-5)

    print("KERNEL_OK")
</pallas_src>

<mosaic_0001>
module attributes {stable_mosaic.version = 11 : i64} {
  func.func @_l2norm_kernel(%arg0: i32, %arg1: i32, %arg2: memref<1x4x256xf32, #tpu.memory_space<vmem>>, %arg3: memref<1x4x1xf32, #tpu.memory_space<vmem>>, %arg4: memref<1x4x256xf32, #tpu.memory_space<vmem>>) attributes {dimension_semantics = [#tpu.dimension_semantics<parallel>, #tpu.dimension_semantics<parallel>], iteration_bounds = array<i64: 2, 1>, scalar_prefetch = 0 : i64, scratch_operands = 0 : i64, tpu.core_type = #tpu.core_type<tc>, window_params = [{transform_indices = @transform_0, window_bounds = array<i64: 1, 4, 256>}, {pipeline_mode = #tpu.pipeline_mode<synchronous>, transform_indices = @transform_1, window_bounds = array<i64: 1, 4, 1>}, {transform_indices = @transform_2, window_bounds = array<i64: 1, 4, 256>}]} {
    %c0 = arith.constant 0 : index
    %c0_0 = arith.constant 0 : index
    %c0_1 = arith.constant 0 : index
    %0 = vector.load %arg2[%c0, %c0_0, %c0_1] : memref<1x4x256xf32, #tpu.memory_space<vmem>>, vector<1x4x256xf32>
    %1 = arith.mulf %0, %0 : vector<1x4x256xf32>
    %cst = arith.constant dense<0.000000e+00> : vector<1x256xf32>
    %2 = vector.multi_reduction <add>, %1, %cst [1] : vector<1x4x256xf32> to vector<1x256xf32>
    %3 = vector.shape_cast %2 : vector<1x256xf32> to vector<1x1x256xf32>
    %cst_2 = arith.constant 1.000000e-24 : f32
    %4 = vector.broadcast %cst_2 : f32 to vector<1x1x256xf32>
    %5 = arith.maximumf %3, %4 : vector<1x1x256xf32>
    %6 = math.rsqrt %5 : vector<1x1x256xf32>
    %c0_3 = arith.constant 0 : index
    %c0_4 = arith.constant 0 : index
    %c0_5 = arith.constant 0 : index
    %7 = vector.load %arg3[%c0_3, %c0_4, %c0_5] : memref<1x4x1xf32, #tpu.memory_space<vmem>>, vector<1x4x1xf32>
    %8 = vector.broadcast %6 : vector<1x1x256xf32> to vector<1x4x256xf32>
    %9 = vector.broadcast %7 : vector<1x4x1xf32> to vector<1x4x256xf32>
    %10 = arith.mulf %8, %9 : vector<1x4x256xf32>
    %11 = arith.mulf %0, %10 : vector<1x4x256xf32>
    %c0_6 = arith.constant 0 : index
    %c0_7 = arith.constant 0 : index
    %c0_8 = arith.constant 0 : index
    %12 = vector.load %arg4[%c0_6, %c0_7, %c0_8] : memref<1x4x256xf32, #tpu.memory_space<vmem>>, vector<1x4x256xf32>
    tpu.vector_store %arg4[%c0_6, %c0_7, %c0_8], %11 {strides = array<i32>} : memref<1x4x256xf32, #tpu.memory_space<vmem>>, vector<1x4x256xf32>,
    return
  }
  func.func @transform_0(%arg0: i32, %arg1: i32) -> (i32, i32, i32) {
    %c0_i32 = arith.constant 0 : i32
    %c0_i32_0 = arith.constant 0 : i32
    return %arg0, %c0_i32, %arg1 : i32, i32, i32
  }
  func.func @transform_1(%arg0: i32, %arg1: i32) -> (i32, i32, i32) {
    %c0_i32 = arith.constant 0 : i32
    %c0_i32_0 = arith.constant 0 : i32
    %c0_i32_1 = arith.constant 0 : i32
    %c0_i32_2 = arith.constant 0 : i32
    return %c0_i32, %c0_i32_0, %c0_i32_1 : i32, i32, i32
  }
  func.func @transform_2(%arg0: i32, %arg1: i32) -> (i32, i32, i32) {
    %c0_i32 = arith.constant 0 : i32
    %c0_i32_0 = arith.constant 0 : i32
    return %arg0, %c0_i32, %arg1 : i32, i32, i32
  }
}

</mosaic_0001>

<bundles_post_ra>
// kernel: tpu_custom_call.1
= control target key start
LH: loop header
LB: loop body
LE: loop exit
PB: predicated region body
PF: predicated region fallthrough
CT: control target
= control target key end

     0   :  { %7 = vsyncpa [#allocation3], 0  ;;  %s673_s0 = inlined_call_operand.hbm [shape: f32[2,4,256], index: 0, kind: input, shape index: {}]   ;;  %s674_s1 = inlined_call_operand.vmem [shape: f32[1,4,1], index: 1, kind: input, shape index: {}]   ;;  %s675_s2 = inlined_call_operand.hbm [shape: f32[2,4,256], index: 2, kind: output, shape index: {}]  }
   0x1   :  { %9 = vsyncpa [#allocation3 + $0x1], 0 }
   0x2   :  { %10 = vsyncpa [#allocation4], 0 }
   0x3   :  { %12 = vsyncpa [#allocation4 + $0x1], 0  ;;  %s532_s9 = smov 0   ;;  %s534_s10 = smov 0  }
   0x4   :  { %s536_s11 = smov 0   ;;  %s538_s12 = smov 0  }
   0x5   :  { %s540_s13 = smov 0   ;;  %s542_s14 = smov 0  }
   0x6 LB: > { %s319_s15 = sadd.s32 4294967295, %s512_s14   ;;  %s320_s16 = sadd.s32 4294967294, %s512_s14   ;;  %s512_s14 = sphi %s542_s14, %s18_s14   ;;  %s508_s13 = sphi %s540_s13, %s687_s13   ;;  %s504_s12 = sphi %s538_s12, %s686_s12   ;;  %s500_s11 = sphi %s536_s11, %s685_s11   ;;  %s496_s10 = sphi %s534_s10, %s684_s10   ;;  %s492_s9 = sphi %s532_s9, %s683_s9  }
   0x7   : > { %s30_s17 = sadd.s32 1, %s508_s13  ;;  %s39_s18 = sadd.s32 1, %s500_s11 }
   0x8   : > { %p32_p0 = scmp.ge.s32.totalorder %s30_s17, 2  ;;  %p46_p1 = scmp.ne.s32.totalorder %s500_s11, %s496_s10 }
   0x9   : > { %p47_p2 = scmp.eq.s32.totalorder %s512_s14, 0  ;;  %p52_p3 = scmp.ne.s32.totalorder %s496_s10, %s492_s9 }
   0xa   : > { %s689_s17 = smov (%p32_p0, %s30_s17), 0  ;;  %p53_p5 = scmp.eq.s32.totalorder %s319_s15, 0 }
   0xb   : > { %p573_p4 = por %p47_p2, %p46_p1  ;;  %s34_s20 = ssub.s32 %s508_s13, %s689_s17 }
   0xc   : > { %p99_p6 = scmp.eq.s32.totalorder %s319_s15, 1  ;;  %p37_p7 = scmp.eq.s32.totalorder %s34_s20, 0 }
   0xd   : > { %p579_p8 = por %p53_p5, %p52_p3  ;;  %p105_p10 = scmp.eq.s32.totalorder %s320_s16, 1 }
   0xe   : > { %p583_p9 = por %p99_p6, %p46_p1  ;;  %p348_p13 = scmp.lt.s32.totalorder %s512_s14, 2 }
   0xf   : > { %s588_s23 = scalar_select %p37_p7, %s500_s11, %s39_s18  }
  0x10   : > { %p590_p11 = por %p105_p10, %p52_p3  ;;  %s128_s25 = sand.u32 1, %s500_s11  }
  0x11   : > { %s323_s26 = sshll.u32 %s128_s25, 3  ;;  %s334_s27 = sshll.u32 %s508_s13, 7 }
  0x12   : > { %s679_s24 = scalar_select %p590_p11, 1, 0 }
  0x13   : > { %s140_s30 = scalar_lea.hbm %s673_s0, %s334_s27  ;;  %s132_s3 = scalar_lea.vmem [#allocation2], %s323_s26 }
  0x14   : > { %s142_s4 = sshll.u32 %s132_s3, 4  ;;  %p603_p0 = pnand %p348_p13, %p573_p4  ;;  %s143_s4 = int_to_ptr.vmem [resolvable:$true] %s142_s4 }
  0x15   : > { %p326_p1 = scmp.ge.s32.totalorder %s512_s14, 1  ;;  %p147_p2 = scmp.lt.s32.totalorder %s512_s14, 3 }
  0x16   : > { %s129_s6 = scalar_lea.sflag [#allocation3], %s128_s25  ;;  %p406_p3 = pneg %p603_p0 }
  0x17   : > { %s417_s7 = scalar_lea.vmem %s143_s4, 128  ;;  %s514_s8 = smov [#allocation2]  }
  0x18   : > { %p418_p5 = scmp.ne.s32.totalorder %s143_s4, %s417_s7  ;;  %s422_s15 = sshll.u32 %s514_s8, 4  ;;  %s423_s15 = int_to_ptr.vmem [resolvable:$false] %s422_s15 }
  0x19   : > { %s424_s16 = scalar_lea.vmem %s423_s15, 256  ;;  %p425_p10 = scmp.lt.s32.totalorder %s143_s4, %s423_s15 }
  0x1a   : > { %p420_p6 = pnand %p418_p5, %p406_p3  ;;  %p426_p12 = scmp.lt.s32.totalorder %s424_s16, %s417_s7 }
  0x1c   : > { %p421_p7 = pneg %p420_p6  ;;  %p427_p4 = por %p426_p12, %p425_p10 }
  0x1e   : > { %p428_p13 = pnand %p427_p4, %p421_p7 }
  0x20   : > { %431 = shalt.err (!%p428_p13)
}
  0x21   : > { %343 = dma.hbm_to_vmem [thread:$0]  (!%p603_p0), %s140_s30, 128, %s143_s4, %s129_s6  }
  0x22   : > { %p148_p11 = pnand %p326_p1, %p147_p2 }
  0x23   : > { %s618_s18 = sand.u32 (!%p148_p11), 1, %s496_s10  }
  0x24   : > { %151 = sbr.rel (%p148_p11) target bundleno = 187 (0xbb), region = 28  ;;  %s327_s19 = sshll.u32 (!%p148_p11), %s618_s18, 3 }
  0x25   : > { %s154_s20 = scalar_lea.sflag (!%p148_p11), [#allocation3], %s618_s18  ;;  %s157_s25 = scalar_lea.vmem (!%p148_p11), [#allocation2], %s327_s19 }
  0x29   : > { %483 = dma.done.wait (%p579_p8), %s154_s20, 128  }
  0x2a   : > { %485 = vsyncadd (%p579_p8), %s154_s20, 4294967168  ;;  %v515_v0 = vmov 0   ;;  %v204_v1 = vld [vmem:[%s674_s1] sm:$0xf]  ;;  %vm185_vm0 = vcmask 1043456   ;;  %s335_s21 = sshll.u32 %s504_s12, 7 }
  0x2b   : > { %399 = vset.pattern.permute.xlu0 %v515_v0  ;;  %v180_v2 = vld [vmem:[%s157_s25] sm:$0xff]  ;;  %s177_s28 = scalar_lea.vmem [#allocation5], %s327_s19  ;;  %s233_s4 = scalar_lea.hbm %s675_s2, %s335_s21 }
  0x2c   : > { %207 = vperm.xlu0 %399, %v204_v1   ;;  %v181_v3 = vmul.f32 %v180_v2, %v180_v2  ;;  %s235_s29 = sshll.u32 %s177_s28, 4  ;;  %s219_s5 = scalar_lea.sflag [#allocation4], %s618_s18  ;;  %s236_s29 = int_to_ptr.vmem [resolvable:$true] %s235_s29 }
  0x2d   : > { %s432_s6 = scalar_lea.vmem %s236_s29, 128  ;;  %s516_s7 = smov [#allocation5]  }
  0x2e   : > { %v183_v4 = vcombine.high %v181_v3, %v181_v3  ;;  %v186_v5 = vsel %vm185_vm0, %v181_v3, 0.0  ;;  %p433_p8 = scmp.ne.s32.totalorder %s236_s29, %s432_s6  ;;  %s436_s8 = sshll.u32 %s516_s7, 4  ;;  %s437_s8 = int_to_ptr.vmem [resolvable:$false] %s436_s8 }
  0x2f   : > { %v187_v7 = vrot.slane %v186_v5, 4  ;;  %s438_s12 = scalar_lea.vmem %s437_s8, 256  ;;  %p439_p0 = scmp.lt.s32.totalorder %s236_s29, %s437_s8 }
  0x30   : > { %v193_v6 = vsel %vm185_vm0, %v183_v4, 0.0  ;;  %p434_p11 = pnand %p433_p8, %p583_p9  ;;  %p440_p1 = scmp.lt.s32.totalorder %s438_s12, %s432_s6 }
  0x31   : > { %v194_v8 = vrot.slane %v193_v6, 4  ;;  %v188_v9 = vadd.f32 %v187_v7, %v186_v5 }
  0x32   : > { %p435_p12 = pneg %p434_p11  ;;  %p441_p2 = por %p440_p1, %p439_p0 }
  0x33   : > { %v195_v10 = vadd.f32 %v194_v8, %v193_v6  ;;  %v189_v11 = vrot.slane %v188_v9, 2 }
  0x34   : > { %p442_p3 = pnand %p441_p2, %p435_p12 }
  0x35   : > { %v196_v12 = vrot.slane %v195_v10, 2  ;;  %v190_v13 = vadd.f32 %v189_v11, %v188_v9 }
  0x37   : > { %v197_v14 = vadd.f32 %v196_v12, %v195_v10  ;;  %v191_v15 = vrot.slane %v190_v13, 1 }
  0x39   : > { %v198_v16 = vrot.slane %v197_v14, 1  ;;  %v192_v17 = vadd.f32 %v191_v15, %v190_v13 }
  0x3b   : > { %v199_v18 = vadd.f32 %v198_v16, %v197_v14  ;;  %v200_v19 = vmax.f32 %v192_v17, 1e-24 }
  0x3d   : > { %v201_v20 = vmax.f32 %v199_v18, 1e-24  ;;  %400 = vrsqrt.f32 %v200_v19 }
  0x3f   : > { %402 = vrsqrt.f32 %v201_v20 }
  0x4a   : > { %v401_v21 = vpop.eup %400 }
  0x4c   : > { %v403_v22 = vpop.eup %402 }
  0xa7   : > { %v208_v23 = vpop.permute.xlu0 %207 }
  0xa8   : > { %v210_v24 = vmul.f32 %v401_v21, %v208_v23  ;;  %v211_v25 = vmul.f32 %v403_v22, %v208_v23 }
  0xaa   : > { %v214_v26 = vcombine.low %v210_v24, %v211_v25 }
  0xac   : > { %v216_v27 = vmul.f32 %v214_v26, %v180_v2 }
  0xae   : > { %217 = vst [vmem:[%s177_s28] sm:$0xff] %v216_v27 }
  0xaf   : > { %445 = shalt.err (!%p442_p3)
}
  0xb0   : > { %s446_s15 = scalar_lea.hbm %s233_s4, 128  ;;  %s450_s19 = scalar_lea.hbm %s675_s2, 256 }
  0xb1   : > { %p447_p5 = scmp.ne.s32.totalorder %s233_s4, %s446_s15  ;;  %p451_p10 = scmp.lt.s32.totalorder %s233_s4, %s675_s2 }
  0xb2   : > { %p452_p4 = scmp.lt.s32.totalorder %s450_s19, %s446_s15 }
  0xb3   : > { %p448_p6 = pnand %p447_p5, %p583_p9 }
  0xb4   : > { %p453_p13 = por %p452_p4, %p451_p10 }
  0xb5   : > { %p449_p7 = pneg %p448_p6 }
  0xb7   : > { %p454_p8 = pnand %p453_p13, %p449_p7 }
  0xb9   : > { %457 = shalt.err (!%p454_p8)
}
  0xba   : > { %338 = dma.vmem_to_hbm [thread:$0]  (%p583_p9), %s236_s29, 128, %s233_s4, %s219_s5  }
  0xbb PF: > { %s247_s26 = sand.u32 1, %s492_s9   ;;  %p681_p11 = scmp.ne.s32.totalorder %s679_s24, 0 }
  0xbc   : > { %p682_p12 = scmp.ge.s32.totalorder %s512_s14, 2  ;;  %s248_s27 = scalar_lea.sflag [#allocation4], %s247_s26 }
  0xbe   : > { %p345_p0 = pnand %p682_p12, %p681_p11 }
  0xc0   : > { %p346_p1 = pneg %p345_p0 }
  0xc2   : > { %487 = dma.done.wait (%p346_p1), %s248_s27, 128  }
  0xc3   : > { %489 = vsyncadd (%p346_p1), %s248_s27, 4294967168  ;;  %s18_s14 = sadd.s32 1, %s512_s14   ;;  %s683_s9 = smov %s496_s10 }
  0xc4   : > { %p15_p2 = scmp.ge.s32.totalorder %s18_s14, 4   ;;  %s684_s10 = smov %s500_s11 }
  0xc5   : > { %s685_s11 = smov %s588_s23  ;;  %s686_s12 = smov %s508_s13 }
  0xc6   : > { %s687_s13 = smov %s689_s17  ;;  %17 = sbr.rel (!%p15_p2) target bundleno = 6 (0x6), region = 73 }
  0xcb   :  { %253 = vsyncpa [#allocation3], 1 }
  0xcc   :  { %255 = vsyncpa [#allocation3 + $0x1], 1 }
  0xcd   :  { %256 = vsyncpa [#allocation4], 1 }
  0xce   :  { %258 = vsyncpa [#allocation4 + $0x1], 1 }

</bundles_post_ra>
